<compile_context>
chip_gen: v6e
topology: v6e:2x2x1
jax: 0.10.0
libtpu: 0.0.40
codegen_flags: <defaults>
</compile_context>

<pallas_src>
import math

import jax
import jax.numpy as jnp
from jax.experimental import pallas as pl
from jax.experimental.pallas import tpu as pltpu


# ---------------------------------------------------------------------------
# Kernels (tiled, reduction axis last, accumulate into resident output block)
# ---------------------------------------------------------------------------
def _noisy_train_kernel(x_ref, eps_in_ref, mu_w_ref, sig_w_ref,
                        eps_out_ref, mu_b_ref, sig_b_ref, o_ref):
    """Training mode.  Weights are pre-transposed: (TK, TN) tiles."""
    k = pl.program_id(1)

    @pl.when(k == 0)
    def _():
        o_ref[...] = jnp.zeros_like(o_ref)

    x = x_ref[...]                                  # (B, TK) f32
    xs = x * eps_in_ref[...]                        # factored-noise input scaling
    wdt = mu_w_ref.dtype
    mu_part = jnp.dot(x.astype(wdt), mu_w_ref[...],
                      preferred_element_type=jnp.float32)
    sig_part = jnp.dot(xs.astype(wdt), sig_w_ref[...],
                       preferred_element_type=jnp.float32)
    o_ref[...] += mu_part + eps_out_ref[...] * sig_part

    @pl.when(k == pl.num_programs(1) - 1)
    def _():
        o_ref[...] += mu_b_ref[...] + sig_b_ref[...] * eps_out_ref[...]


def _linear_eval_kernel(x_ref, mu_w_ref, mu_b_ref, o_ref):
    """Eval mode: plain linear with mu_weight / mu_bias only."""
    k = pl.program_id(1)

    @pl.when(k == 0)
    def _():
        o_ref[...] = jnp.zeros_like(o_ref)

    o_ref[...] += jnp.dot(x_ref[...].astype(mu_w_ref.dtype), mu_w_ref[...],
                          preferred_element_type=jnp.float32)

    @pl.when(k == pl.num_programs(1) - 1)
    def _():
        o_ref[...] += mu_b_ref[...]


# ---------------------------------------------------------------------------
# Single-block fast path (grid=()) for small layers
# ---------------------------------------------------------------------------
def _noisy_train_small_kernel(x_ref, eps_in_ref, mu_w_ref, sig_w_ref,
                              eps_out_ref, mu_b_ref, sig_b_ref, o_ref):
    x = x_ref[...]
    xs = x * eps_in_ref[...]
    wdt = mu_w_ref.dtype
    out = jnp.dot(x.astype(wdt), mu_w_ref[...],
                  preferred_element_type=jnp.float32)
    out += eps_out_ref[...] * jnp.dot(xs.astype(wdt), sig_w_ref[...],
                                      preferred_element_type=jnp.float32)
    out += mu_b_ref[...] + sig_b_ref[...] * eps_out_ref[...]
    o_ref[...] = out.astype(o_ref.dtype)


def _linear_eval_small_kernel(x_ref, mu_w_ref, mu_b_ref, o_ref):
    out = jnp.dot(x_ref[...].astype(mu_w_ref.dtype), mu_w_ref[...],
                  preferred_element_type=jnp.float32)
    o_ref[...] = (out + mu_b_ref[...]).astype(o_ref.dtype)


# ---------------------------------------------------------------------------
# Wrapper / parameter preparation
# ---------------------------------------------------------------------------
def _round_up(n, m):
    return ((n + m - 1) // m) * m


def _choose_tile(dim_padded, max_tile):
    """Largest multiple of 128 that divides dim_padded and is <= max_tile."""
    best = 128
    t = 128
    cap = min(dim_padded, max_tile)
    while t <= cap:
        if dim_padded % t == 0:
            best = t
        t += 128
    return best


def init_noisy_linear(key, in_features, out_features, sigma_init=0.5):
    """Mirrors NoisyLinear.__init__ + reset_parameters + reset_noise().

    Noise is kept factored (eps_in, eps_out); the dense O x I epsilon_weight is
    never materialized."""
    k_mu_w, k_mu_b, k_eps_in, k_eps_out = jax.random.split(key, 4)
    bound = 1.0 / math.sqrt(in_features)

    def scale_noise(k, size):
        v = jax.random.normal(k, (size,), dtype=jnp.float32)
        return jnp.sign(v) * jnp.sqrt(jnp.abs(v))

    return dict(
        mu_weight=jax.random.uniform(k_mu_w, (out_features, in_features),
                                     minval=-bound, maxval=bound,
                                     dtype=jnp.float32),
        sigma_weight=jnp.full((out_features, in_features),
                              sigma_init / math.sqrt(in_features), jnp.float32),
        mu_bias=jax.random.uniform(k_mu_b, (out_features,),
                                   minval=-bound, maxval=bound,
                                   dtype=jnp.float32),
        sigma_bias=jnp.full((out_features,),
                            sigma_init / math.sqrt(out_features), jnp.float32),
        epsilon_in=scale_noise(k_eps_in, in_features),
        epsilon_out=scale_noise(k_eps_out, out_features),
    )


def prepare_noisy_linear(params, param_dtype=jnp.float32):
    """One-time layout prep: pad to multiples of 128, pre-transpose weights to
    (I_pad, O_pad), reshape noise/bias vectors to lane-dense (1, N) rows.

    param_dtype=jnp.bfloat16 streams the weights at half the HBM bytes (opt-in
    numerics change); all accumulation stays f32."""
    mu_w = params["mu_weight"]
    O, I = mu_w.shape
    I_pad, O_pad = _round_up(I, 128), _round_up(O, 128)

    def pad_wt(w):                     # (O, I) -> padded (I_pad, O_pad)
        wt = jnp.transpose(w)
        return jnp.pad(wt, ((0, I_pad - I), (0, O_pad - O))).astype(param_dtype)

    def pad_row(v, n_pad):             # (N,) -> (1, n_pad) f32
        v = v.reshape(1, -1).astype(jnp.float32)
        return jnp.pad(v, ((0, 0), (0, n_pad - v.shape[1])))

    return dict(
        mu_w_t=pad_wt(mu_w),
        sig_w_t=pad_wt(params["sigma_weight"]),
        eps_in=pad_row(params["epsilon_in"], I_pad),
        eps_out=pad_row(params["epsilon_out"], O_pad),
        mu_b=pad_row(params["mu_bias"], O_pad),
        sig_b=pad_row(params["sigma_bias"], O_pad),
        in_features=I, out_features=O, I_pad=I_pad, O_pad=O_pad)


def noisy_linear_forward(x, kp, *, training=True, max_tn=512, max_tk=1024,
                         small_limit_bytes=2 << 20):
    """Pallas forward for NoisyLinear on prepared params `kp`."""
    B, I = x.shape
    assert I == kp["in_features"]
    I_pad, O_pad, O = kp["I_pad"], kp["O_pad"], kp["out_features"]

    # Only the tiny activation is padded per call; weights are pre-padded.
    x_p = x if I == I_pad else jnp.pad(x, ((0, 0), (0, I_pad - I)))
    out_shape = jax.ShapeDtypeStruct((B, O_pad), x.dtype)

    wb = jnp.dtype(kp["mu_w_t"].dtype).itemsize
    n_w = 2 if training else 1
    total_bytes = (B * I_pad * 4 + n_w * I_pad * O_pad * wb + B * O_pad * 4
                   + (4 * O_pad + I_pad) * 4)

    if total_bytes <= small_limit_bytes:
        # ---- single-block fast path: whole (padded) problem in VMEM ----
        if training:
            out_padded = pl.pallas_call(
                _noisy_train_small_kernel, out_shape=out_shape,
            )(x_p, kp["eps_in"], kp["mu_w_t"], kp["sig_w_t"],
              kp["eps_out"], kp["mu_b"], kp["sig_b"])
        else:
            out_padded = pl.pallas_call(
                _linear_eval_small_kernel, out_shape=out_shape,
            )(x_p, kp["mu_w_t"], kp["mu_b"])
        return out_padded[:, :O]

    # ---- tiled, pipelined path ----
    # >= 2 output tiles whenever possible so the "parallel" axis shards across
    # v7x's two TensorCores.
    tn_cap = min(max_tn, O_pad // 2) if O_pad >= 256 else max_tn
    TN = _choose_tile(O_pad, tn_cap)
    TK = _choose_tile(I_pad, max_tk)
    grid = (O_pad // TN, I_pad // TK)          # (parallel j, reduction k last)

    # Double-buffered input tiles + resident output block, with 2x headroom;
    # cap at 48 MiB so the same tile choice stays safe on v7x (64 MiB VMEM).
    in_bytes = (B * TK + TK) * 4 + 2 * TK * TN * wb + 3 * TN * 4
    est_bytes = 2 * (in_bytes + B * TN * 4)
    vmem_limit = int(min(48 * 2**20, max(2 * est_bytes, 16 * 2**20)))

    compiler_params = pltpu.CompilerParams(
        dimension_semantics=("parallel", "arbitrary"),
        vmem_limit_bytes=vmem_limit)

    x_spec = pl.BlockSpec((B, TK), lambda j, k: (0, k))
    ein_spec = pl.BlockSpec((1, TK), lambda j, k: (0, k))
    w_spec = pl.BlockSpec((TK, TN), lambda j, k: (k, j))   # pre-transposed weights
    row_spec = pl.BlockSpec((1, TN), lambda j, k: (0, j))  # eps_out / biases
    o_spec = pl.BlockSpec((B, TN), lambda j, k: (0, j))

    if training:
        out_padded = pl.pallas_call(
            _noisy_train_kernel,
            out_shape=out_shape,
            grid_spec=pltpu.PrefetchScalarGridSpec(
                num_scalar_prefetch=0,
                grid=grid,
                in_specs=[x_spec, ein_spec, w_spec, w_spec,
                          row_spec, row_spec, row_spec],
                out_specs=o_spec),
            compiler_params=compiler_params,
        )(x_p, kp["eps_in"], kp["mu_w_t"], kp["sig_w_t"],
          kp["eps_out"], kp["mu_b"], kp["sig_b"])
    else:
        out_padded = pl.pallas_call(
            _linear_eval_kernel,
            out_shape=out_shape,
            grid_spec=pltpu.PrefetchScalarGridSpec(
                num_scalar_prefetch=0,
                grid=grid,
                in_specs=[x_spec, w_spec, row_spec],
                out_specs=o_spec),
            compiler_params=compiler_params,
        )(x_p, kp["mu_w_t"], kp["mu_b"])

    return out_padded[:, :O]


# ---------------------------------------------------------------------------
# Reference + self-test
# ---------------------------------------------------------------------------
def _reference_forward(x, params, training=True):
    if training:
        eps_w = jnp.outer(params["epsilon_out"], params["epsilon_in"])
        w = params["mu_weight"] + params["sigma_weight"] * eps_w
        b = params["mu_bias"] + params["sigma_bias"] * params["epsilon_out"]
    else:
        w = params["mu_weight"]
        b = params["mu_bias"]
    return x @ w.T + b


if __name__ == "__main__":
    key = jax.random.PRNGKey(0)

    configs = [
        # (batch, in_features, out_features, forward kwargs)
        (8, 32, 32, {}),                                    # DQN-sized -> fast path
        (8, 384, 256, dict(small_limit_bytes=0,             # force tiled path,
                           max_tn=128, max_tk=128)),        # grid=(2, 3)
        (8, 384, 256, {}),                                  # defaults (fast path)
    ]
    for (batch, in_f, out_f, kwargs) in configs:
        key, k_param, k_x = jax.random.split(key, 3)
        params = init_noisy_linear(k_param, in_f, out_f, sigma_init=0.5)
        kp = prepare_noisy_linear(params)
        x = jax.random.normal(k_x, (batch, in_f), dtype=jnp.float32)

        # training-mode forward (factored noisy weights)
        y = jax.block_until_ready(
            noisy_linear_forward(x, kp, training=True, **kwargs))
        y_ref = _reference_forward(x, params, training=True)
        assert y.shape == (batch, out_f)
        assert jnp.allclose(y, y_ref, atol=1e-4, rtol=1e-4), "train mismatch"

        # eval-mode forward (mu only, lean path)
        y_eval = jax.block_until_ready(
            noisy_linear_forward(x, kp, training=False, **kwargs))
        y_eval_ref = _reference_forward(x, params, training=False)
        assert jnp.allclose(y_eval, y_eval_ref, atol=1e-4, rtol=1e-4), \
            "eval mismatch"

    # Optional bf16 weight streaming (half HBM weight bytes, f32 accumulation).
    key, k_param, k_x = jax.random.split(key, 3)
    params = init_noisy_linear(k_param, 384, 256, sigma_init=0.5)
    kp16 = prepare_noisy_linear(params, param_dtype=jnp.bfloat16)
    x = jax.random.normal(k_x, (8, 384), dtype=jnp.float32)
    y16 = jax.block_until_ready(
        noisy_linear_forward(x, kp16, training=True, small_limit_bytes=0))
    y_ref = _reference_forward(x, params, training=True)
    assert jnp.allclose(y16, y_ref, atol=5e-2, rtol=5e-2), "bf16 mismatch"

    print("KERNEL_OK")
</pallas_src>

<mosaic_0001>
module attributes {stable_mosaic.version = 11 : i64} {
  func.func @_noisy_train_small_kernel(%arg0: memref<8x128xf32, #tpu.memory_space<vmem>>, %arg1: memref<1x128xf32, #tpu.memory_space<vmem>>, %arg2: memref<128x128xf32, #tpu.memory_space<vmem>>, %arg3: memref<128x128xf32, #tpu.memory_space<vmem>>, %arg4: memref<1x128xf32, #tpu.memory_space<vmem>>, %arg5: memref<1x128xf32, #tpu.memory_space<vmem>>, %arg6: memref<1x128xf32, #tpu.memory_space<vmem>>, %arg7: memref<8x128xf32, #tpu.memory_space<vmem>>) attributes {dimension_semantics = [], scalar_prefetch = 0 : i64, scratch_operands = 0 : i64, tpu.core_type = #tpu.core_type<tc>} {
    %c0 = arith.constant 0 : index
    %c0_0 = arith.constant 0 : index
    %0 = vector.load %arg0[%c0, %c0_0] : memref<8x128xf32, #tpu.memory_space<vmem>>, vector<8x128xf32>
    %c0_1 = arith.constant 0 : index
    %c0_2 = arith.constant 0 : index
    %1 = vector.load %arg1[%c0_1, %c0_2] : memref<1x128xf32, #tpu.memory_space<vmem>>, vector<1x128xf32>
    %2 = vector.broadcast %1 : vector<1x128xf32> to vector<8x128xf32>
    %3 = arith.mulf %0, %2 : vector<8x128xf32>
    %c0_3 = arith.constant 0 : index
    %c0_4 = arith.constant 0 : index
    %4 = vector.load %arg2[%c0_3, %c0_4] : memref<128x128xf32, #tpu.memory_space<vmem>>, vector<128x128xf32>
    %cst = arith.constant dense<0.000000e+00> : vector<8x128xf32>
    %5 = tpu.matmul %0, %4, %cst {dimension_numbers = #tpu.dot_dimension_numbers<[1], [0], [0], [1], [0, 0, 1, 1], [], []>} : vector<8x128xf32>, vector<128x128xf32>, vector<8x128xf32> -> vector<8x128xf32>
    %c0_5 = arith.constant 0 : index
    %c0_6 = arith.constant 0 : index
    %6 = vector.load %arg4[%c0_5, %c0_6] : memref<1x128xf32, #tpu.memory_space<vmem>>, vector<1x128xf32>
    %c0_7 = arith.constant 0 : index
    %c0_8 = arith.constant 0 : index
    %7 = vector.load %arg3[%c0_7, %c0_8] : memref<128x128xf32, #tpu.memory_space<vmem>>, vector<128x128xf32>
    %cst_9 = arith.constant dense<0.000000e+00> : vector<8x128xf32>
    %8 = tpu.matmul %3, %7, %cst_9 {dimension_numbers = #tpu.dot_dimension_numbers<[1], [0], [0], [1], [0, 0, 1, 1], [], []>} : vector<8x128xf32>, vector<128x128xf32>, vector<8x128xf32> -> vector<8x128xf32>
    %9 = vector.broadcast %6 : vector<1x128xf32> to vector<8x128xf32>
    %10 = arith.mulf %9, %8 : vector<8x128xf32>
    %11 = arith.addf %5, %10 : vector<8x128xf32>
    %c0_10 = arith.constant 0 : index
    %c0_11 = arith.constant 0 : index
    %12 = vector.load %arg5[%c0_10, %c0_11] : memref<1x128xf32, #tpu.memory_space<vmem>>, vector<1x128xf32>
    %c0_12 = arith.constant 0 : index
    %c0_13 = arith.constant 0 : index
    %13 = vector.load %arg6[%c0_12, %c0_13] : memref<1x128xf32, #tpu.memory_space<vmem>>, vector<1x128xf32>
    %c0_14 = arith.constant 0 : index
    %c0_15 = arith.constant 0 : index
    %14 = vector.load %arg4[%c0_14, %c0_15] : memref<1x128xf32, #tpu.memory_space<vmem>>, vector<1x128xf32>
    %15 = arith.mulf %13, %14 : vector<1x128xf32>
    %16 = arith.addf %12, %15 : vector<1x128xf32>
    %17 = vector.broadcast %16 : vector<1x128xf32> to vector<8x128xf32>
    %18 = arith.addf %11, %17 : vector<8x128xf32>
    %c0_16 = arith.constant 0 : index
    %c0_17 = arith.constant 0 : index
    %19 = vector.load %arg7[%c0_16, %c0_17] : memref<8x128xf32, #tpu.memory_space<vmem>>, vector<8x128xf32>
    tpu.vector_store %arg7[%c0_16, %c0_17], %18 {strides = array<i32>} : memref<8x128xf32, #tpu.memory_space<vmem>>, vector<8x128xf32>,
    return
  }
}

</mosaic_0001>

<bundles_post_ra>
// kernel: tpu_custom_call.1
= control target key start
LH: loop header
LB: loop body
LE: loop exit
PB: predicated region body
PF: predicated region fallthrough
CT: control target
= control target key end

     0   :  { %12 = vsyncpa [#allocation3], 0  ;;  %s588_s0 = inlined_call_operand.hbm [shape: f32[8,128], index: 0, kind: input, shape index: {}]   ;;  %s589_s1 = inlined_call_operand.vmem [shape: f32[1,128], index: 1, kind: input, shape index: {}]   ;;  %s590_s2 = inlined_call_operand.hbm [shape: f32[128,128], index: 2, kind: input, shape index: {}]   ;;  %s591_s3 = inlined_call_operand.hbm [shape: f32[128,128], index: 3, kind: input, shape index: {}]   ;;  %s592_s4 = inlined_call_operand.vmem [shape: f32[1,128], index: 4, kind: input, shape index: {}]   ;;  %s593_s5 = inlined_call_operand.vmem [shape: f32[1,128], index: 5, kind: input, shape index: {}]   ;;  %s594_s6 = inlined_call_operand.vmem [shape: f32[1,128], index: 6, kind: input, shape index: {}]   ;;  %s595_s7 = inlined_call_operand.hbm [shape: f32[8,128], index: 7, kind: output, shape index: {}]  }
   0x1   :  { %13 = vsyncpa [#allocation6], 0 }
   0x2   :  { %14 = vsyncpa [#allocation4], 0  ;;  %s482_s24 = smov [#allocation5]  }
   0x3   :  { %s32_s25 = sshll.u32 %s482_s24, 4  ;;  %s33_s25 = int_to_ptr.vmem [resolvable:$true] %s32_s25 }
   0x4   :  { %s404_s26 = scalar_lea.vmem %s33_s25, 2048  ;;  %p409_p1 = scmp.lt.s32.totalorder %s33_s25, %s33_s25 }
   0x5   :  { %p405_p0 = scmp.ne.s32.totalorder %s33_s25, %s404_s26  ;;  %p410_p2 = scmp.lt.s32.totalorder %s404_s26, %s404_s26 }
   0x7   :  { %p411_p3 = por %p410_p2, %p409_p1 }
   0x9   :  { %p412_p4 = pnand %p411_p3, %p405_p0 }
   0xb   :  { %415 = shalt.err (!%p412_p4)
}
   0xc   :  { %s483_s27 = smov 128   ;;  %s484_s28 = smov 8  }
   0xd   :  { %38 = dma.hbm_to_vmem [thread:$0]  %s590_s2, 2048, %s33_s25, [#allocation6], %s483_s27, %s483_s27, %s484_s28  }
   0xe   :  { %s485_s8 = smov [#allocation2]   ;;  %s486_s10 = smov [#allocation7]  }
   0xf   :  { %s21_s9 = sshll.u32 %s485_s8, 4  ;;  %s44_s11 = sshll.u32 %s486_s10, 4  ;;  %s22_s9 = int_to_ptr.vmem [resolvable:$true] %s21_s9  ;;  %s45_s11 = int_to_ptr.vmem [resolvable:$true] %s44_s11 }
  0x10   :  { %s424_s12 = scalar_lea.vmem %s22_s9, 128  ;;  %p429_p6 = scmp.lt.s32.totalorder %s22_s9, %s22_s9 }
  0x11   :  { %p425_p5 = scmp.ne.s32.totalorder %s22_s9, %s424_s12  ;;  %p430_p7 = scmp.lt.s32.totalorder %s424_s12, %s424_s12 }
  0x13   :  { %p431_p8 = por %p430_p7, %p429_p6 }
  0x15   :  { %p432_p9 = pnand %p431_p8, %p425_p5 }
  0x17   :  { %435 = shalt.err (!%p432_p9)
}
  0x18   :  { %24 = dma.hbm_to_vmem [thread:$0]  %s588_s0, 128, %s22_s9, [#allocation3]  }
  0x19   :  { %s444_s15 = scalar_lea.vmem %s45_s11, 2048  ;;  %p449_p11 = scmp.lt.s32.totalorder %s45_s11, %s45_s11 }
  0x1a   :  { %p445_p10 = scmp.ne.s32.totalorder %s45_s11, %s444_s15  ;;  %p450_p12 = scmp.lt.s32.totalorder %s444_s15, %s444_s15 }
  0x1c   :  { %p451_p13 = por %p450_p12, %p449_p11 }
  0x1e   :  { %p452_p0 = pnand %p451_p13, %p445_p10 }
  0x20   :  { %455 = shalt.err (!%p452_p0)
}
  0x21   :  { %50 = dma.hbm_to_vmem [thread:$0]  %s591_s3, 2048, %s45_s11, [#allocation6], %s483_s27, %s483_s27, %s484_s28  }
  0x22   :  { %476 = dma.done.wait [#allocation3], 128  }
  0x23   :  { %477 = vsyncadd [#allocation3], 4294967168 }
  0x24   :  { %478 = dma.done.wait [#allocation6], 4096  }
  0x25   :  { %479 = vsyncadd [#allocation6], 4294963200  ;;  %v487_v0 = vmov 0.0   ;;  %vm488_vm0 = vmmov 0   ;;  %v107_v1 = vld [vmem:[#allocation7 + $0x78] sm:$0xff]  ;;  %v106_v3 = vld [vmem:[#allocation7 + $0x70] sm:$0xff]  ;;  %v179_v36 = vlaneseq }
  0x26   :  { %318 = vmatprep.subr.mxu0 %v487_v0  ;;  %353 = vmatprep.subr.mxu1 %v487_v0  ;;  %v90_v2 = vld [vmem:[#allocation5 + $0x78] sm:$0xff]  ;;  %v89_v4 = vld [vmem:[#allocation5 + $0x70] sm:$0xff]  ;;  %v105_v5 = vld [vmem:[#allocation7 + $0x68] sm:$0xff]  ;;  %s489_s22 = smov [#allocation8]  }
  0x27   :  { %350 = vmatprep.mubr.msk.f32.mxu0 %vm488_vm0, %v487_v0  ;;  %385 = vmatprep.mubr.msk.f32.mxu1 %vm488_vm0, %v487_v0  ;;  %v88_v6 = vld [vmem:[#allocation5 + $0x68] sm:$0xff]  ;;  %v104_v7 = vld [vmem:[#allocation7 + $0x60] sm:$0xff]  ;;  %v103_v9 = vld [vmem:[#allocation7 + $0x58] sm:$0xff]  ;;  %v180_v37 = vshrl.u32 %v179_v36, 7 }
  0x28   :  { %319 = vmatpush3.msra.mxu0 %v107_v1  ;;  %354 = vmatpush3.msra.mxu1 %v90_v2  ;;  %v87_v8 = vld [vmem:[#allocation5 + $0x60] sm:$0xff]  ;;  %v86_v10 = vld [vmem:[#allocation5 + $0x58] sm:$0xff]  ;;  %v102_v11 = vld [vmem:[#allocation7 + $0x50] sm:$0xff] }
  0x29   :  { %320 = vmatprep.subr.mxu0 %v487_v0  ;;  %355 = vmatprep.subr.mxu1 %v487_v0  ;;  %v85_v12 = vld [vmem:[#allocation5 + $0x50] sm:$0xff]  ;;  %v101_v13 = vld [vmem:[#allocation7 + $0x48] sm:$0xff]  ;;  %v100_v15 = vld [vmem:[#allocation7 + $0x40] sm:$0xff]  ;;  %v181_v40 = vsub.s32 0, %v180_v37 }
  0x2a   :  { %321 = vmatpush3.msra.mxu0 %v106_v3  ;;  %356 = vmatpush3.msra.mxu1 %v89_v4  ;;  %v84_v14 = vld [vmem:[#allocation5 + $0x48] sm:$0xff]  ;;  %v83_v16 = vld [vmem:[#allocation5 + $0x40] sm:$0xff]  ;;  %v99_v17 = vld [vmem:[#allocation7 + $0x38] sm:$0xff] }
  0x2b   :  { %322 = vmatprep.subr.mxu0 %v487_v0  ;;  %357 = vmatprep.subr.mxu1 %v487_v0  ;;  %v82_v18 = vld [vmem:[#allocation5 + $0x38] sm:$0xff]  ;;  %v98_v19 = vld [vmem:[#allocation7 + $0x30] sm:$0xff]  ;;  %v97_v21 = vld [vmem:[#allocation7 + $0x28] sm:$0xff] }
  0x2c   :  { %323 = vmatpush3.msra.mxu0 %v105_v5  ;;  %358 = vmatpush3.msra.mxu1 %v88_v6  ;;  %v81_v20 = vld [vmem:[#allocation5 + $0x30] sm:$0xff]  ;;  %v80_v22 = vld [vmem:[#allocation5 + $0x28] sm:$0xff]  ;;  %v96_v23 = vld [vmem:[#allocation7 + $0x20] sm:$0xff] }
  0x2d   :  { %324 = vmatprep.subr.mxu0 %v487_v0  ;;  %359 = vmatprep.subr.mxu1 %v487_v0  ;;  %v79_v24 = vld [vmem:[#allocation5 + $0x20] sm:$0xff]  ;;  %v95_v25 = vld [vmem:[#allocation7 + $0x18] sm:$0xff]  ;;  %v94_v27 = vld [vmem:[#allocation7 + $0x10] sm:$0xff] }
  0x2e   :  { %325 = vmatpush3.msra.mxu0 %v104_v7  ;;  %360 = vmatpush3.msra.mxu1 %v87_v8  ;;  %v78_v26 = vld [vmem:[#allocation5 + $0x18] sm:$0xff]  ;;  %v77_v28 = vld [vmem:[#allocation5 + $0x10] sm:$0xff]  ;;  %v93_v31 = vld [vmem:[#allocation7 + $0x8] sm:$0xff] }
  0x2f   :  { %326 = vmatprep.subr.mxu0 %v487_v0  ;;  %361 = vmatprep.subr.mxu1 %v487_v0  ;;  %v66_v29 = vld [vmem:[#allocation2] sm:$0xff]  ;;  %v76_v32 = vld [vmem:[#allocation5 + $0x8] sm:$0xff]  ;;  %v92_v33 = vld [vmem:[#allocation7] sm:$0xff] }
  0x30   :  { %327 = vmatpush3.msra.mxu0 %v103_v9  ;;  %362 = vmatpush3.msra.mxu1 %v86_v10  ;;  %v283_v30 = vld [vmem:[%s589_s1] ss:$0 sm:$0xff]  ;;  %v75_v34 = vld [vmem:[#allocation5] sm:$0xff] }
  0x31   :  { %328 = vmatprep.subr.mxu0 %v487_v0  ;;  %363 = vmatprep.subr.mxu1 %v487_v0  ;;  %v74_v35 = vmul.f32 %v283_v30, %v66_v29  ;;  %v91_v38 = vld [vmem:[%s592_s4] sm:$0x1]  ;;  %s273_s4 = sshll.u32 %s489_s22, 4  ;;  %s274_s4 = int_to_ptr.vmem [resolvable:$true] %s273_s4 }
  0x32   :  { %329 = vmatpush3.msra.mxu0 %v102_v11  ;;  %364 = vmatpush3.msra.mxu1 %v85_v12  ;;  %v256_v39 = vld [vmem:[%s594_s6] sm:$0x1]  ;;  %v182_v43 = vrot.slane %v91_v38, %v181_v40  ;;  %s456_s6 = scalar_lea.vmem %s274_s4, 128  ;;  %p461_p2 = scmp.lt.s32.totalorder %s274_s4, %s274_s4 }
  0x33   :  { %330 = vmatprep.subr.mxu0 %v487_v0  ;;  %365 = vmatprep.subr.mxu1 %v487_v0  ;;  %v257_v41 = vmul.f32 %v256_v39, %v91_v38  ;;  %v255_v42 = vld [vmem:[%s593_s5] sm:$0x1]  ;;  %p457_p1 = scmp.ne.s32.totalorder %s274_s4, %s456_s6  ;;  %p462_p3 = scmp.lt.s32.totalorder %s456_s6, %s456_s6 }
  0x34   :  { %331 = vmatpush3.msra.mxu0 %v101_v13  ;;  %366 = vmatpush3.msra.mxu1 %v84_v14 }
  0x35   :  { %332 = vmatprep.subr.mxu0 %v487_v0  ;;  %367 = vmatprep.subr.mxu1 %v487_v0  ;;  %v258_v44 = vadd.f32 %v257_v41, %v255_v42  ;;  %p463_p4 = por %p462_p3, %p461_p2 }
  0x36   :  { %333 = vmatpush3.msra.mxu0 %v100_v15  ;;  %368 = vmatpush3.msra.mxu1 %v83_v16 }
  0x37   :  { %334 = vmatprep.subr.mxu0 %v487_v0  ;;  %369 = vmatprep.subr.mxu1 %v487_v0  ;;  %v263_v48 = vrot.slane %v258_v44, %v181_v40  ;;  %p464_p5 = pnand %p463_p4, %p457_p1 }
  0x38   :  { %335 = vmatpush3.msra.mxu0 %v99_v17  ;;  %370 = vmatpush3.msra.mxu1 %v82_v18 }
  0x39   :  { %336 = vmatprep.subr.mxu0 %v487_v0  ;;  %371 = vmatprep.subr.mxu1 %v487_v0 }
  0x3a   :  { %337 = vmatpush3.msra.mxu0 %v98_v19  ;;  %372 = vmatpush3.msra.mxu1 %v81_v20 }
  0x3b   :  { %338 = vmatprep.subr.mxu0 %v487_v0  ;;  %373 = vmatprep.subr.mxu1 %v487_v0 }
  0x3c   :  { %339 = vmatpush3.msra.mxu0 %v97_v21  ;;  %374 = vmatpush3.msra.mxu1 %v80_v22 }
  0x3d   :  { %340 = vmatprep.subr.mxu0 %v487_v0  ;;  %375 = vmatprep.subr.mxu1 %v487_v0 }
  0x3e   :  { %341 = vmatpush3.msra.mxu0 %v96_v23  ;;  %376 = vmatpush3.msra.mxu1 %v79_v24 }
  0x3f   :  { %342 = vmatprep.subr.mxu0 %v487_v0  ;;  %377 = vmatprep.subr.mxu1 %v487_v0 }
  0x40   :  { %343 = vmatpush3.msra.mxu0 %v95_v25  ;;  %378 = vmatpush3.msra.mxu1 %v78_v26 }
  0x41   :  { %344 = vmatprep.subr.mxu0 %v487_v0  ;;  %379 = vmatprep.subr.mxu1 %v487_v0 }
  0x42   :  { %345 = vmatpush3.msra.mxu0 %v94_v27  ;;  %380 = vmatpush3.msra.mxu1 %v77_v28 }
  0x43   :  { %346 = vmatprep.subr.mxu0 %v487_v0  ;;  %381 = vmatprep.subr.mxu1 %v487_v0 }
  0x44   :  { %347 = vmatpush3.msra.mxu0 %v93_v31  ;;  %382 = vmatpush3.msra.mxu1 %v76_v32 }
  0x45   :  { %348 = vmatprep.subr.mxu0 %v487_v0  ;;  %383 = vmatprep.subr.mxu1 %v487_v0 }
  0x46   :  { %349 = vmatpush3.msra.mxu0 %v92_v33  ;;  %384 = vmatpush3.msra.mxu1 %v75_v34 }
  0x47   :  { %351 = vmatmul.mubr.f32.vlgmr.msra.gmra.mxu0 %v74_v35  ;;  %386 = vmatmul.mubr.f32.vlgmr.msra.gmra.mxu1 %v66_v29 }
 0x107   :  { %v174_v45 = vpop.f32.mrf.mxu0  ;;  %v251_v46 = vpop.f32.mrf.mxu1 }
 0x108   :  { %v184_v47 = vmul.f32 %v182_v43, %v174_v45 }
 0x109   :  { %v352_v49 = vpop.f32.mrf.mxu0  ;;  %v387_v50 = vpop.f32.mrf.mxu1 }
 0x10a   :  { %v252_v51 = vadd.f32 %v251_v46, %v184_v47 }
 0x10c   :  { %v265_v52 = vadd.f32 %v263_v48, %v252_v51 }
 0x10e   :  { %266 = vst [vmem:[#allocation8] sm:$0xff] %v265_v52 }
 0x10f   :  { %467 = shalt.err (!%p464_p5)
}
 0x110   :  { %276 = dma.vmem_to_hbm [thread:$0]  %s274_s4, 128, %s595_s7, [#allocation4]  }
 0x111   :  { %480 = dma.done.wait [#allocation4], 128  }
 0x112   :  { %481 = vsyncadd [#allocation4], 4294967168 }
 0x113   :  { %280 = vsyncpa [#allocation3], 1 }
 0x114   :  { %281 = vsyncpa [#allocation6], 1 }
 0x115   :  { %282 = vsyncpa [#allocation4], 1 }

</bundles_post_ra>
